<compile_context>
chip_gen: v6e
topology: v6e:2x2x1
jax: 0.10.0
libtpu: 0.0.40
codegen_flags: <defaults>
</compile_context>

<pallas_src>
import numpy as np

import jax
import jax.numpy as jnp
from jax.experimental import pallas as pl
from jax.experimental.pallas import tpu as pltpu


# ---------------------------------------------------------------------------
# Per-generation VMEM budgeting.
#  v5e / v6e: 128 MiB physical VMEM per TensorCore;  v7x: 64 MiB.
# We query the capacity (falling back to the conservative v7x value), raise the
# scoped VMEM limit, and size the double-buffered pipeline working set from it.
# ---------------------------------------------------------------------------
def _vmem_capacity_bytes():
    try:
        return int(pltpu.get_tpu_info().vmem_capacity_bytes)
    except Exception:
        return 64 * 1024 * 1024  # conservative fallback = v7x per-core VMEM


_VMEM_CAP = _vmem_capacity_bytes()
# Scoped VMEM limit we request (leave headroom below physical capacity).
_VMEM_LIMIT = int(min(_VMEM_CAP * 3 // 4, 96 * 1024 * 1024))
# Budget for the double-buffered input/output blocks (headroom for temporaries).
_PIPELINE_BUDGET = _VMEM_LIMIT * 7 // 10


def _round_up(x, m):
    return ((x + m - 1) // m) * m


def _pick_tile_s(S, L, H, x_itemsize):
    """Largest sublane-aligned sentence tile whose double-buffered blocks fit the
    VMEM budget, while keeping >= ~4 grid steps when S allows (so the 'parallel'
    grid axis can shard across megacore / v7x's two TensorCores)."""
    per_row = (
        2 * (L * H * x_itemsize        # x block (double-buffered)
             + 2 * L * x_itemsize      # fused weight block
             + 2 * 1 * 4               # inv-count block
             + 2 * H * 4)              # output block (f32)
        + 8 * H * 4                    # in-kernel f32 accumulator (sublane-padded)
    )
    tile = _PIPELINE_BUDGET // per_row
    tile = min(tile, _round_up(pl.cdiv(S, 4), 8))  # keep a few grid steps when possible
    tile = min(tile, _round_up(S, 8))              # never bigger than the problem
    tile = max(tile, 8)
    return int((tile // 8) * 8)


# ---------------------------------------------------------------------------
# Fused pooling kernel.
# ---------------------------------------------------------------------------
def _fused_pool_kernel(x_ref, w_ref, inv_ref, o_ref):
    """Fused {sentence-mean, probing-topic-mean} pooling for one sentence tile.

    x_ref:   (tS, L, H)  token features (bf16 recommended; f32 also works)
    w_ref:   (tS, 2, L)  per-token membership counts for the two poolings
    inv_ref: (tS, 2, 1)  f32 reciprocal of the total counts (host-precomputed)
    o_ref:   (tS, 2, H)  f32 pooled features
    """
    # Batched contraction over the token axis runs on the MXU with f32
    # accumulation, keeping VPU/XLU free so the kernel stays DMA-limited.
    # (bf16 x/w: exact MXU products + f32 accumulation.  For f32 inputs the
    # MXU uses XLA's default matmul precision.)
    acc = jnp.einsum(
        "skl,slh->skh", w_ref[...], x_ref[...],
        preferred_element_type=jnp.float32)
    # Scale by the precomputed 1/count — no in-kernel reduce or divide needed.
    o_ref[...] = acc * inv_ref[...]


def fused_masked_mean_pool(x, w_counts, inv_cnt):
    """x: [S, L, H] (bf16/f32); w_counts: [S, 2, L]; inv_cnt: [S, 2, 1] f32.

    Returns [S, 2, H] f32:
      [:, 0, :] = sentence mean   (tokens 1..num_tokens)
      [:, 1, :] = probing-topic mean (top-k important-word spans)
    """
    S, L, H = x.shape
    x_itemsize = jnp.dtype(x.dtype).itemsize
    tile_s = _pick_tile_s(S, L, H, x_itemsize)
    num_blocks = pl.cdiv(S, tile_s)
    s_pad = num_blocks * tile_s

    # Pad ONLY the tiny host-side weight arrays (zero rows); x itself is left
    # unpadded — the partial tail block's out-of-bounds x rows are multiplied
    # by zero weights and the corresponding output rows are discarded.
    w_counts = np.asarray(w_counts, dtype=np.float32)
    inv_cnt = np.asarray(inv_cnt, dtype=np.float32)
    if w_counts.shape[0] != s_pad:
        pad = s_pad - w_counts.shape[0]
        w_counts = np.pad(w_counts, ((0, pad), (0, 0), (0, 0)))
        inv_cnt = np.pad(inv_cnt, ((0, pad), (0, 0), (0, 0)))

    w_dev = jnp.asarray(w_counts, dtype=x.dtype)   # small-integer counts: exact in bf16
    inv_dev = jnp.asarray(inv_cnt, dtype=jnp.float32)

    return pl.pallas_call(
        _fused_pool_kernel,
        out_shape=jax.ShapeDtypeStruct((S, 2, H), jnp.float32),
        grid=(num_blocks,),
        in_specs=[
            pl.BlockSpec((tile_s, L, H), lambda i: (i, 0, 0)),
            pl.BlockSpec((tile_s, 2, L), lambda i: (i, 0, 0)),
            pl.BlockSpec((tile_s, 2, 1), lambda i: (i, 0, 0)),
        ],
        out_specs=pl.BlockSpec((tile_s, 2, H), lambda i: (i, 0, 0)),
        compiler_params=pltpu.CompilerParams(
            dimension_semantics=("parallel",),
            vmem_limit_bytes=_VMEM_LIMIT,
        ),
    )(x, w_dev, inv_dev)


# ---------------------------------------------------------------------------
# Host-side glue: build BOTH weight channels + reciprocal counts (pure Python
# list manipulation, identical control flow to the PyTorch module).
# ---------------------------------------------------------------------------
def build_pool_weights(num_tokens_nested, sorted_iw_spans_nested, L, top_iw,
                       use_probing_topic=True):
    """channel 0: sentence mask over tokens [1, n+1)  (the `[j,1:n+1].mean(0)`).
    channel 1: counts of how many top-k spans cover each token (overlaps double
    count, like torch.cat); fallback = sentence mask when no spans.
    Returns (counts [S,2,L] f32, inv_count [S,2,1] f32)."""
    flat_ntok = [n for doc in num_tokens_nested for n in doc]
    S = len(flat_ntok)
    w = np.zeros((S, 2, L), dtype=np.float32)
    for s, n in enumerate(flat_ntok):
        w[s, 0, 1:n + 1] = 1.0
    if use_probing_topic:
        flat_spans = [sp for doc in sorted_iw_spans_nested for sp in doc]
        for s, spans in enumerate(flat_spans):
            if spans is None or spans == []:
                w[s, 1, 1:flat_ntok[s] + 1] = 1.0
            else:
                use = spans[:top_iw] if len(spans) >= top_iw else spans
                for (a, b) in use:
                    w[s, 1, a:b + 1] += 1.0
    inv = (1.0 / np.maximum(w.sum(axis=2), 1.0)).astype(np.float32)[:, :, None]
    return w, inv


# ---------------------------------------------------------------------------
# BertProber.forward (post-BERT part) driven by the fused Pallas kernel.
# ---------------------------------------------------------------------------
def bert_prober_forward(
    review_token_feature,      # [sum(review_lengths), L_rev, H]  (stand-in for last_hidden_state)
    reply_token_feature,       # [sum(reply_lengths),  L_rep, H]
    review_num_tokens, reply_num_tokens,
    review_sorted_iw_spans, reply_sorted_iw_spans,
    review_lengths, reply_lengths,
    use_probing_topic=True, top_iw=2,
):
    assert review_token_feature.shape[0] == sum(review_lengths)
    assert reply_token_feature.shape[0] == sum(reply_lengths)
    L_rev = review_token_feature.shape[1]
    L_rep = reply_token_feature.shape[1]

    rev_w, rev_inv = build_pool_weights(
        review_num_tokens, review_sorted_iw_spans, L_rev, top_iw, use_probing_topic)
    rep_w, rep_inv = build_pool_weights(
        reply_num_tokens, reply_sorted_iw_spans, L_rep, top_iw, use_probing_topic)

    # ONE pass over each large token tensor computes both poolings.
    rev_pool = fused_masked_mean_pool(review_token_feature, rev_w, rev_inv)  # [S,2,H]
    rep_pool = fused_masked_mean_pool(reply_token_feature, rep_w, rep_inv)   # [S,2,H]

    rev_sent_flat, rev_pt_flat = rev_pool[:, 0, :], rev_pool[:, 1, :]
    rep_sent_flat, rep_pt_flat = rep_pool[:, 0, :], rep_pool[:, 1, :]

    def split_by_lengths(flat, lengths):
        out, off = [], 0
        for n in lengths:
            out.append(flat[off:off + n])
            off += n
        return out

    review_feature = split_by_lengths(rev_sent_flat, review_lengths)
    reply_feature = split_by_lengths(rep_sent_flat, reply_lengths)
    if use_probing_topic:
        review_pt_feature = split_by_lengths(rev_pt_flat, review_lengths)
        reply_pt_feature = split_by_lengths(rep_pt_flat, reply_lengths)
    else:
        review_pt_feature = None
        reply_pt_feature = None
    return review_pt_feature, review_feature, reply_pt_feature, reply_feature


# ---------------------------------------------------------------------------
# Pure-numpy reference mirroring the torch loops exactly (for correctness).
# ---------------------------------------------------------------------------
def _ref_forward_np(token_feat, num_tokens_nested, spans_nested, lengths,
                    top_iw, use_probing_topic):
    x = np.asarray(jnp.asarray(token_feat, jnp.float32))
    sent_feats, pt_feats = [], []
    off = 0
    for i, n_sent in enumerate(lengths):
        doc = x[off:off + n_sent]
        off += n_sent
        for j in range(n_sent):
            n = num_tokens_nested[i][j]
            sent_feats.append(doc[j, 1:n + 1].mean(0))
            if use_probing_topic:
                spans = spans_nested[i][j]
                if spans is None or spans == []:
                    pt_feats.append(doc[j, 1:n + 1].mean(0))
                else:
                    use = spans[:top_iw] if len(spans) >= top_iw else spans
                    pieces = [doc[j, a:b + 1] for (a, b) in use]
                    pt_feats.append(np.concatenate(pieces, 0).mean(0))
    return (np.stack(sent_feats),
            np.stack(pt_feats) if use_probing_topic else None)


if __name__ == "__main__":
    key = jax.random.PRNGKey(0)
    H = 128                # hidden size (BERT uses 768 = 6*128; lane-dense demo value)
    L_rev, L_rep = 12, 10  # padded token lengths
    review_lengths = [3, 2]   # sentences per review doc -> 5 total
    reply_lengths = [2, 2]    # sentences per reply doc  -> 4 total

    review_num_tokens = [[6, 8, 5], [7, 9]]
    reply_num_tokens = [[5, 6], [7, 4]]

    # [batch][sent] -> list of (start, end) inclusive spans, or None/[]
    review_sorted_iw_spans = [
        [[(2, 3), (5, 6), (1, 1)], None, [(1, 2)]],
        [[], [(3, 5), (7, 8)]],
    ]
    reply_sorted_iw_spans = [
        [[(1, 2)], None],
        [[(2, 4), (5, 6), (1, 1)], []],
    ]

    k1, k2 = jax.random.split(key)
    # bf16 token features (recommended: halves HBM bytes for the dominant operand).
    review_token_feature = jax.random.normal(
        k1, (sum(review_lengths), L_rev, H), jnp.float32).astype(jnp.bfloat16)
    reply_token_feature = jax.random.normal(
        k2, (sum(reply_lengths), L_rep, H), jnp.float32).astype(jnp.bfloat16)

    rev_pt, rev_f, rep_pt, rep_f = bert_prober_forward(
        review_token_feature, reply_token_feature,
        review_num_tokens, reply_num_tokens,
        review_sorted_iw_spans, reply_sorted_iw_spans,
        review_lengths, reply_lengths,
        use_probing_topic=True, top_iw=2,
    )
    outs = jax.block_until_ready((rev_pt, rev_f, rep_pt, rep_f))

    # Correctness check against the loop-for-loop reference (same bf16 inputs).
    ref_rev_sent, ref_rev_pt = _ref_forward_np(
        review_token_feature, review_num_tokens, review_sorted_iw_spans,
        review_lengths, 2, True)
    ref_rep_sent, ref_rep_pt = _ref_forward_np(
        reply_token_feature, reply_num_tokens, reply_sorted_iw_spans,
        reply_lengths, 2, True)

    got_rev_pt = np.concatenate([np.asarray(a) for a in outs[0]], 0)
    got_rev_sent = np.concatenate([np.asarray(a) for a in outs[1]], 0)
    got_rep_pt = np.concatenate([np.asarray(a) for a in outs[2]], 0)
    got_rep_sent = np.concatenate([np.asarray(a) for a in outs[3]], 0)

    np.testing.assert_allclose(got_rev_sent, ref_rev_sent, rtol=1e-4, atol=1e-4)
    np.testing.assert_allclose(got_rev_pt, ref_rev_pt, rtol=1e-4, atol=1e-4)
    np.testing.assert_allclose(got_rep_sent, ref_rep_sent, rtol=1e-4, atol=1e-4)
    np.testing.assert_allclose(got_rep_pt, ref_rep_pt, rtol=1e-4, atol=1e-4)

    print("KERNEL_OK")
</pallas_src>

<mosaic_0001>
module attributes {stable_mosaic.version = 11 : i64} {
  func.func @_fused_pool_kernel(%arg0: i32, %arg1: memref<8x12x128xbf16, #tpu.memory_space<vmem>>, %arg2: memref<8x2x12xbf16, #tpu.memory_space<vmem>>, %arg3: memref<8x2x1xf32, #tpu.memory_space<vmem>>, %arg4: memref<8x2x128xf32, #tpu.memory_space<vmem>>) attributes {dimension_semantics = [#tpu.dimension_semantics<parallel>], iteration_bounds = array<i64: 1>, scalar_prefetch = 0 : i64, scratch_operands = 0 : i64, tpu.core_type = #tpu.core_type<tc>, window_params = [{transform_indices = @transform_0, window_bounds = array<i64: 8, 12, 128>}, {transform_indices = @transform_1, window_bounds = array<i64: 8, 2, 12>}, {transform_indices = @transform_2, window_bounds = array<i64: 8, 2, 1>}, {transform_indices = @transform_3, window_bounds = array<i64: 8, 2, 128>}]} {
    %c0 = arith.constant 0 : index
    %c0_0 = arith.constant 0 : index
    %c0_1 = arith.constant 0 : index
    %0 = vector.load %arg2[%c0, %c0_0, %c0_1] : memref<8x2x12xbf16, #tpu.memory_space<vmem>>, vector<8x2x12xbf16>
    %c0_2 = arith.constant 0 : index
    %c0_3 = arith.constant 0 : index
    %c0_4 = arith.constant 0 : index
    %1 = vector.load %arg1[%c0_2, %c0_3, %c0_4] : memref<8x12x128xbf16, #tpu.memory_space<vmem>>, vector<8x12x128xbf16>
    "tpu.trace_start"() <{level = 10 : i32, message = "skl,slh->skh"}> : () -> ()
    %cst = arith.constant dense<0.000000e+00> : vector<8x2x128xf32>
    %2 = tpu.matmul %0, %1, %cst {dimension_numbers = #tpu.dot_dimension_numbers<[2], [1], [1], [2], [0, 0, 0, 1, 1, 2], [0], [0]>} : vector<8x2x12xbf16>, vector<8x12x128xbf16>, vector<8x2x128xf32> -> vector<8x2x128xf32>
    "tpu.trace_stop"() : () -> ()
    %c0_5 = arith.constant 0 : index
    %c0_6 = arith.constant 0 : index
    %c0_7 = arith.constant 0 : index
    %3 = vector.load %arg3[%c0_5, %c0_6, %c0_7] : memref<8x2x1xf32, #tpu.memory_space<vmem>>, vector<8x2x1xf32>
    %4 = vector.broadcast %3 : vector<8x2x1xf32> to vector<8x2x128xf32>
    %5 = arith.mulf %2, %4 : vector<8x2x128xf32>
    %c0_8 = arith.constant 0 : index
    %c0_9 = arith.constant 0 : index
    %c0_10 = arith.constant 0 : index
    %6 = vector.load %arg4[%c0_8, %c0_9, %c0_10] : memref<8x2x128xf32, #tpu.memory_space<vmem>>, vector<8x2x128xf32>
    tpu.vector_store %arg4[%c0_8, %c0_9, %c0_10], %5 {strides = array<i32>} : memref<8x2x128xf32, #tpu.memory_space<vmem>>, vector<8x2x128xf32>,
    return
  }
  func.func @transform_0(%arg0: i32) -> (i32, i32, i32) {
    %c0_i32 = arith.constant 0 : i32
    %c0_i32_0 = arith.constant 0 : i32
    %c0_i32_1 = arith.constant 0 : i32
    return %arg0, %c0_i32, %c0_i32_0 : i32, i32, i32
  }
  func.func @transform_1(%arg0: i32) -> (i32, i32, i32) {
    %c0_i32 = arith.constant 0 : i32
    %c0_i32_0 = arith.constant 0 : i32
    %c0_i32_1 = arith.constant 0 : i32
    return %arg0, %c0_i32, %c0_i32_0 : i32, i32, i32
  }
  func.func @transform_2(%arg0: i32) -> (i32, i32, i32) {
    %c0_i32 = arith.constant 0 : i32
    %c0_i32_0 = arith.constant 0 : i32
    %c0_i32_1 = arith.constant 0 : i32
    return %arg0, %c0_i32, %c0_i32_0 : i32, i32, i32
  }
  func.func @transform_3(%arg0: i32) -> (i32, i32, i32) {
    %c0_i32 = arith.constant 0 : i32
    %c0_i32_0 = arith.constant 0 : i32
    %c0_i32_1 = arith.constant 0 : i32
    return %arg0, %c0_i32, %c0_i32_0 : i32, i32, i32
  }
}

</mosaic_0001>

<bundles_post_ra>
// kernel: tpu_custom_call.1
= control target key start
LH: loop header
LB: loop body
LE: loop exit
PB: predicated region body
PF: predicated region fallthrough
CT: control target
= control target key end

     0   :  { %8 = vsyncpa [#allocation3], 0  ;;  %s811_s0 = inlined_call_operand.hbm [shape: bf16[5,12,128], index: 0, kind: input, shape index: {}]   ;;  %s812_s1 = inlined_call_operand.vmem [shape: bf16[8,2,12], index: 1, kind: input, shape index: {}]   ;;  %s813_s2 = inlined_call_operand.vmem [shape: f32[8,2,1], index: 2, kind: input, shape index: {}]   ;;  %s814_s3 = inlined_call_operand.hbm [shape: f32[5,2,128], index: 3, kind: output, shape index: {}]  }
   0x1   :  { %9 = vsyncpa [#allocation4], 0 }
   0x2   :  { %14 = vsyncadd [#allocation3], 384  ;;  %s688_s12 = smov [#allocation2]  }
   0x3   :  { %s15_s13 = sshll.u32 %s688_s12, 4  ;;  %s16_s13 = int_to_ptr.vmem [resolvable:$true] %s15_s13 }
   0x4   :  { %s652_s14 = scalar_lea.vmem %s16_s13, 640  ;;  %s656_s15 = scalar_lea.vmem %s16_s13, 1024 }
   0x5   :  { %p653_p0 = scmp.ne.s32.totalorder %s16_s13, %s652_s14  ;;  %p657_p1 = scmp.lt.s32.totalorder %s16_s13, %s16_s13 }
   0x6   :  { %p658_p2 = scmp.lt.s32.totalorder %s656_s15, %s652_s14 }
   0x8   :  { %p659_p3 = por %p658_p2, %p657_p1 }
   0xa   :  { %p660_p4 = pnand %p659_p3, %p653_p0 }
   0xc   :  { %663 = shalt.err (!%p660_p4)
}
   0xd   :  { %s689_s16 = smov 64   ;;  %s690_s17 = smov 4  }
   0xe   :  { %21 = dma.hbm_to_vmem [thread:$0]  %s811_s0, 640, %s16_s13, [#allocation3], %s689_s16, %s689_s16, %s690_s17  }
   0xf   :  { %684 = dma.done.wait [#allocation3], 1024  }
  0x10   :  { %685 = vsyncadd [#allocation3], 4294966272  ;;  %v691_v0 = vmov 0.0   ;;  %vm692_vm0 = vmmov 0   ;;  %v693_v1 = vmov 0   ;;  %vm63_vm1 = vcmask 1045504  }
  0x11   :  { %577 = vmatprep.subr.bf16.mxu0 %v691_v0  ;;  %583 = vmatprep.subr.bf16.mxu1 %v691_v0  ;;  %v636_v2 = vld [vmem:[#allocation2] sm:$0x3f]   ;;  %v637_v3 = vld [vmem:[#allocation2 + $0x8] sm:$0x3f]   ;;  %vm59_vm2 = vcmask 97280  }
  0x12   :  { %579 = vmatprep.mubr.msk.bf16.mxu0 %vm692_vm0, %v691_v0  ;;  %585 = vmatprep.mubr.msk.bf16.mxu1 %vm692_vm0, %v691_v0  ;;  %v65_v4 = vsel %vm63_vm1, %v636_v2, 0  ;;  %v30_v5 = vld [vmem:[%s812_s1] sm:$0x1]  ;;  %v31_v6 = vld [vmem:[%s812_s1 + $0x1] sm:$0x1]  ;;  %v116_v7 = vsel %vm63_vm1, %v637_v3, 0 }
  0x13   :  { %634 = vset.pattern.permute.xlu0 %v693_v1  ;;  %635 = vset.pattern.permute.xlu1 %v693_v1  ;;  %v638_v8 = vld [vmem:[#allocation2 + $0x10] sm:$0x3f]   ;;  %v639_v9 = vld [vmem:[#allocation2 + $0x18] sm:$0x3f]   ;;  %v640_v12 = vld [vmem:[#allocation2 + $0x20] sm:$0x3f]  }
  0x14   :  { %578 = vmatpush3.bf16.msra.mxu0 %v65_v4  ;;  %584 = vmatpush3.bf16.msra.mxu1 %v116_v7  ;;  %v167_v10 = vsel %vm63_vm1, %v638_v8, 0  ;;  %v218_v11 = vsel %vm63_vm1, %v639_v9, 0  ;;  %v641_v13 = vld [vmem:[#allocation2 + $0x28] sm:$0x3f]   ;;  %v32_v14 = vld [vmem:[%s812_s1 + $0x2] sm:$0x1] }
  0x15   :  { %589 = vmatprep.subr.bf16.mxu0 %v691_v0  ;;  %595 = vmatprep.subr.bf16.mxu1 %v691_v0  ;;  %v33_v15 = vld [vmem:[%s812_s1 + $0x3] sm:$0x1]  ;;  %v269_v16 = vsel %vm63_vm1, %v640_v12, 0  ;;  %v320_v17 = vsel %vm63_vm1, %v641_v13, 0  ;;  %v464_v18 = vld [vmem:[%s813_s2] sm:$0x3] }
  0x16   :  { %474 = vperm.xlu0 %634, %v464_v18   ;;  %v465_v19 = vld [vmem:[%s813_s2 + $0x2] sm:$0x3]  ;;  %v642_v20 = vld [vmem:[#allocation2 + $0x30] sm:$0x3f]   ;;  %v466_v21 = vld [vmem:[%s813_s2 + $0x4] sm:$0x3] }
  0x17   :  { %580 = vmatmul.mubr.msk.bf16.vlgmr.msra.gmra.mxu0 %vm59_vm2, %v30_v5  ;;  %586 = vmatmul.mubr.msk.bf16.vlgmr.msra.gmra.mxu1 %vm59_vm2, %v31_v6  ;;  %v643_v22 = vld [vmem:[#allocation2 + $0x38] sm:$0x3f]   ;;  %v34_v23 = vld [vmem:[%s812_s1 + $0x4] sm:$0x1]  ;;  %v468_v24 = vld [vmem:[%s813_s2 + $0x8] sm:$0x3] }
  0x18   :  { %590 = vmatpush3.bf16.msra.mxu0 %v167_v10  ;;  %596 = vmatpush3.bf16.msra.mxu1 %v218_v11  ;;  %v35_v25 = vld [vmem:[%s812_s1 + $0x5] sm:$0x1]  ;;  %v371_v26 = vsel %vm63_vm1, %v642_v20, 0  ;;  %v422_v27 = vsel %vm63_vm1, %v643_v22, 0  ;;  %v467_v28 = vld [vmem:[%s813_s2 + $0x6] sm:$0x3] }
  0x19   :  { %591 = vmatprep.mubr.msk.bf16.mxu0 %vm692_vm0, %v691_v0  ;;  %597 = vmatprep.mubr.msk.bf16.mxu1 %vm692_vm0, %v691_v0  ;;  %v470_v29 = vld [vmem:[%s813_s2 + $0xc] sm:$0x3]  ;;  %v469_v30 = vld [vmem:[%s813_s2 + $0xa] sm:$0x3]  ;;  %v36_v31 = vld [vmem:[%s812_s1 + $0x6] sm:$0x1] }
  0x1a   :  { %601 = vmatprep.subr.bf16.mxu0 %v691_v0  ;;  %607 = vmatprep.subr.bf16.mxu1 %v691_v0  ;;  %v37_v32 = vld [vmem:[%s812_s1 + $0x7] sm:$0x1]  ;;  %v471_v33 = vld [vmem:[%s813_s2 + $0xe] sm:$0x3] }
  0x1b   :  { %479 = vperm.xlu0 %634, %v465_v19   ;;  %484 = vperm.xlu1 %635, %v466_v21  }
  0x1f   :  { %592 = vmatmul.mubr.msk.bf16.vlgmr.msra.gmra.mxu0 %vm59_vm2, %v32_v14  ;;  %598 = vmatmul.mubr.msk.bf16.vlgmr.msra.gmra.mxu1 %vm59_vm2, %v33_v15 }
  0x20   :  { %602 = vmatpush3.bf16.msra.mxu0 %v269_v16  ;;  %608 = vmatpush3.bf16.msra.mxu1 %v320_v17 }
  0x21   :  { %603 = vmatprep.mubr.msk.bf16.mxu0 %vm692_vm0, %v691_v0  ;;  %609 = vmatprep.mubr.msk.bf16.mxu1 %vm692_vm0, %v691_v0 }
  0x22   :  { %613 = vmatprep.subr.bf16.mxu0 %v691_v0  ;;  %619 = vmatprep.subr.bf16.mxu1 %v691_v0 }
  0x23   :  { %494 = vperm.xlu0 %634, %v468_v24   ;;  %489 = vperm.xlu1 %635, %v467_v28  }
  0x27   :  { %604 = vmatmul.mubr.msk.bf16.vlgmr.msra.gmra.mxu0 %vm59_vm2, %v34_v23  ;;  %610 = vmatmul.mubr.msk.bf16.vlgmr.msra.gmra.mxu1 %vm59_vm2, %v35_v25 }
  0x28   :  { %614 = vmatpush3.bf16.msra.mxu0 %v371_v26  ;;  %620 = vmatpush3.bf16.msra.mxu1 %v422_v27 }
  0x29   :  { %615 = vmatprep.mubr.msk.bf16.mxu0 %vm692_vm0, %v691_v0  ;;  %621 = vmatprep.mubr.msk.bf16.mxu1 %vm692_vm0, %v691_v0 }
  0x2a   :  { %504 = vperm.xlu0 %634, %v470_v29   ;;  %499 = vperm.xlu1 %635, %v469_v30  }
  0x2e   :  { %509 = vperm.xlu1 %635, %v471_v33  }
  0x2f   :  { %616 = vmatmul.mubr.msk.bf16.vlgmr.msra.gmra.mxu0 %vm59_vm2, %v36_v31  ;;  %622 = vmatmul.mubr.msk.bf16.vlgmr.msra.gmra.mxu1 %vm59_vm2, %v37_v32 }
  0x91   :  { %v475_v34 = vpop.permute.xlu0 %474 }
  0x96   :  { %v480_v35 = vpop.permute.xlu0 %479  ;;  %v485_v39 = vpop.permute.xlu1 %484 }
  0x9e   :  { %v490_v47 = vpop.permute.xlu1 %489  ;;  %v495_v58 = vpop.permute.xlu0 %494 }
  0xa5   :  { %v500_v60 = vpop.permute.xlu1 %499  ;;  %v505_v6 = vpop.permute.xlu0 %504 }
  0xa9   :  { %v510_v8 = vpop.permute.xlu1 %509 }
  0xd7   :  { %v101_v36 = vpop.f32.mrf.mxu0  ;;  %v152_v38 = vpop.f32.mrf.mxu1 }
  0xd8   :  { %v512_v37 = vmul.f32 %v475_v34, %v101_v36  ;;  %v513_v40 = vmul.f32 %v480_v35, %v152_v38 }
  0xd9   :  { %v581_v41 = vpop.f32.mrf.mxu0  ;;  %v587_v42 = vpop.f32.mrf.mxu1 }
  0xda   :  { %520 = vst [vmem:[#allocation5] sm:$0x3] %v512_v37  ;;  %521 = vst [vmem:[#allocation5 + $0x2] sm:$0x3] %v513_v40 }
  0xdb   :  { %v104_v43 = vpop.f32.mrf.mxu0  ;;  %v155_v44 = vpop.f32.mrf.mxu1 }
  0xdd   :  { %v582_v45 = vpop.f32.mrf.mxu0  ;;  %v588_v46 = vpop.f32.mrf.mxu1 }
  0xdf   :  { %v203_v48 = vpop.f32.mrf.mxu0  ;;  %v254_v50 = vpop.f32.mrf.mxu1 }
  0xe0   :  { %v514_v49 = vmul.f32 %v485_v39, %v203_v48  ;;  %v515_v51 = vmul.f32 %v490_v47, %v254_v50 }
  0xe1   :  { %v593_v52 = vpop.f32.mrf.mxu0  ;;  %v599_v53 = vpop.f32.mrf.mxu1 }
  0xe2   :  { %522 = vst [vmem:[#allocation5 + $0x4] sm:$0x3] %v514_v49  ;;  %523 = vst [vmem:[#allocation5 + $0x6] sm:$0x3] %v515_v51 }
  0xe3   :  { %v206_v54 = vpop.f32.mrf.mxu0  ;;  %v257_v55 = vpop.f32.mrf.mxu1 }
  0xe5   :  { %v594_v56 = vpop.f32.mrf.mxu0  ;;  %v600_v57 = vpop.f32.mrf.mxu1 }
  0xe7   :  { %v305_v59 = vpop.f32.mrf.mxu0  ;;  %v356_v62 = vpop.f32.mrf.mxu1 }
  0xe8   :  { %v516_v61 = vmul.f32 %v495_v58, %v305_v59  ;;  %v517_v63 = vmul.f32 %v500_v60, %v356_v62 }
  0xe9   :  { %v605_v0 = vpop.f32.mrf.mxu0  ;;  %v611_v1 = vpop.f32.mrf.mxu1 }
  0xea   :  { %524 = vst [vmem:[#allocation5 + $0x8] sm:$0x3] %v516_v61  ;;  %525 = vst [vmem:[#allocation5 + $0xa] sm:$0x3] %v517_v63 }
  0xeb   :  { %v308_v2 = vpop.f32.mrf.mxu0  ;;  %v359_v3 = vpop.f32.mrf.mxu1 }
  0xed   :  { %v606_v4 = vpop.f32.mrf.mxu0  ;;  %v612_v5 = vpop.f32.mrf.mxu1 }
  0xef   :  { %v407_v7 = vpop.f32.mrf.mxu0  ;;  %v458_v10 = vpop.f32.mrf.mxu1 }
  0xf0   :  { %v518_v9 = vmul.f32 %v505_v6, %v407_v7  ;;  %v519_v11 = vmul.f32 %v510_v8, %v458_v10 }
  0xf1   :  { %v617_v12 = vpop.f32.mrf.mxu0  ;;  %v623_v13 = vpop.f32.mrf.mxu1 }
  0xf2   :  { %526 = vst [vmem:[#allocation5 + $0xc] sm:$0x3] %v518_v9  ;;  %527 = vst [vmem:[#allocation5 + $0xe] sm:$0x3] %v519_v11 }
  0xf3   :  { %v410_v14 = vpop.f32.mrf.mxu0  ;;  %v461_v15 = vpop.f32.mrf.mxu1 }
  0xf5   :  { %v618_v16 = vpop.f32.mrf.mxu0  ;;  %v624_v17 = vpop.f32.mrf.mxu1 }
  0xf6   :  { %532 = vsyncadd [#allocation4], 96  ;;  %s694_s1 = smov [#allocation5]  }
  0xf7   :  { %s533_s2 = sshll.u32 %s694_s1, 4  ;;  %s534_s2 = int_to_ptr.vmem [resolvable:$true] %s533_s2 }
  0xf8   :  { %s664_s23 = scalar_lea.vmem %s534_s2, 160  ;;  %s668_s24 = scalar_lea.vmem %s534_s2, 256 }
  0xf9   :  { %p665_p5 = scmp.ne.s32.totalorder %s534_s2, %s664_s23  ;;  %p669_p6 = scmp.lt.s32.totalorder %s534_s2, %s534_s2 }
  0xfa   :  { %p670_p7 = scmp.lt.s32.totalorder %s668_s24, %s664_s23 }
  0xfc   :  { %p671_p8 = por %p670_p7, %p669_p6 }
  0xfe   :  { %p672_p9 = pnand %p671_p8, %p665_p5 }
 0x100   :  { %675 = shalt.err (!%p672_p9)
}
 0x101   :  { %s695_s25 = smov 32   ;;  %s696_s26 = smov 2  }
 0x102   :  { %539 = dma.vmem_to_hbm [thread:$0]  %s534_s2, 160, %s814_s3, [#allocation4], %s695_s25, %s695_s25, %s696_s26  }
 0x103   :  { %686 = dma.done.wait [#allocation4], 256  }
 0x104   :  { %687 = vsyncadd [#allocation4], 4294967040 }
 0x105   :  { %543 = vsyncpa [#allocation3], 1 }
 0x106   :  { %544 = vsyncpa [#allocation4], 1 }

</bundles_post_ra>
